<compile_context>
chip_gen: v5e
topology: v5e:2x2
jax: 0.10.0
libtpu: 0.0.40
codegen_flags: <defaults>
</compile_context>

<pallas_src>
import functools

import jax
import jax.numpy as jnp
from jax.experimental import pallas as pl
from jax.experimental.pallas import tpu as pltpu


# ---------------------------------------------------------------------------
# Pallas kernel: fused 3-layer MLP (Linear -> tanh -> Linear -> tanh -> Linear)
# ---------------------------------------------------------------------------
def _pinn_mlp_kernel(x_ref, w1_ref, b1_ref, w2_ref, b2_ref, w3_ref, b3_ref, o_ref,
                     *, act_dtype):
    x = x_ref[...]            # (2, block_n) f32, batch on lanes
    w1 = w1_ref[...]          # (64, 2) f32

    # Layer 1: contraction length is only 2 -> two VPU broadcast FMAs instead of a
    # nearly-empty MXU push (frees the vex/MXU slot and skips an MRF round trip).
    z1 = w1[:, 0:1] * x[0:1, :] + w1[:, 1:2] * x[1:2, :] + b1_ref[...]

    # act_dtype is bf16 on v6e/v7x (bf16 EUP halves tanh vreg traffic and makes the
    # MXU operands bf16 without any per-step pack ops), f32 on v5e / accuracy mode.
    h1 = jnp.tanh(z1.astype(act_dtype))                        # (64, block_n)

    # Layer 2: 64x64 on the MXU, operands already in act_dtype, f32 accumulation.
    z2 = jnp.dot(w2_ref[...], h1, preferred_element_type=jnp.float32) + b2_ref[...]
    h2 = jnp.tanh(z2.astype(act_dtype))                        # (64, block_n)

    # Layer 3: (2, 64) @ (64, block_n) -> lane-dense (2, block_n) output tile.
    z3 = jnp.dot(w3_ref[...], h2, preferred_element_type=jnp.float32) + b3_ref[...]
    o_ref[...] = z3.astype(o_ref.dtype)


def _default_use_bf16():
    """bf16 tanh/MXU operands on chips with bf16 VPU/EUP (v6e, v7x); f32 otherwise."""
    try:
        kind = jax.devices()[0].device_kind.lower()
    except Exception:  # pragma: no cover - be permissive off-TPU
        return True
    for tag in ("v2", "v3", "v4", "v5"):   # no bf16 EUP/VPU on these generations
        if tag in kind:
            return False
    return True


def _auto_block_n(n):
    n_tiles = pl.cdiv(n, 128)               # number of 128-lane groups
    if n_tiles <= 1:
        return 128
    # Up to 32 tiles (4096 lanes) per block to amortize the ~0.35 us per-grid-step
    # overhead, but keep >= 2 grid steps so both v7x TensorCores get work.
    block_tiles = min(32, max(1, n_tiles // 2))
    return 128 * block_tiles


def pinn_forward_features_major(xt, params, *, block_n=None, use_bf16=None):
    """Fused PINN MLP on a feature-major stream.  xt: (2, N) f32 -> (2, N) f32."""
    w1, b1, w2, b2, w3, b3 = params          # PyTorch layout: W (out, in), b (out, 1)
    d_in, n = xt.shape
    d_h = w1.shape[0]
    d_out = w3.shape[0]
    assert d_in == 2, f"kernel hardcodes d_in=2, got {d_in}"
    assert w2.shape == (d_h, d_h) and w3.shape == (d_out, d_h)

    if use_bf16 is None:
        use_bf16 = _default_use_bf16()
    act_dtype = jnp.bfloat16 if use_bf16 else jnp.float32

    if block_n is None:
        block_n = _auto_block_n(n)

    # Pre-cast the MXU weights once in the wrapper (review item): no per-step casts.
    w2c = w2.astype(act_dtype)
    w3c = w3.astype(act_dtype)

    grid = (pl.cdiv(n, block_n),)            # ragged last block handled by Pallas
    kernel = functools.partial(_pinn_mlp_kernel, act_dtype=act_dtype)

    out = pl.pallas_call(
        kernel,
        out_shape=jax.ShapeDtypeStruct((d_out, n), jnp.float32),
        grid_spec=pltpu.PrefetchScalarGridSpec(
            num_scalar_prefetch=0,
            grid=grid,
            in_specs=[
                # Streamed input tile (double-buffered by the BlockSpec pipeline).
                pl.BlockSpec((d_in, block_n), lambda i: (0, i)),
                # Constant index maps -> weights/biases stay resident in VMEM and are
                # not re-DMA'd per grid step; only x/out tiles are pipelined.
                pl.BlockSpec((d_h, d_in), lambda i: (0, 0)),   # W1 (64, 2) f32
                pl.BlockSpec((d_h, 1), lambda i: (0, 0)),      # b1 (64, 1) f32
                pl.BlockSpec((d_h, d_h), lambda i: (0, 0)),    # W2 (64, 64) act_dtype
                pl.BlockSpec((d_h, 1), lambda i: (0, 0)),      # b2 (64, 1) f32
                pl.BlockSpec((d_out, d_h), lambda i: (0, 0)),  # W3 (2, 64) act_dtype
                pl.BlockSpec((d_out, 1), lambda i: (0, 0)),    # b3 (2, 1) f32
            ],
            out_specs=pl.BlockSpec((d_out, block_n), lambda i: (0, i)),
        ),
        compiler_params=pltpu.CompilerParams(
            dimension_semantics=("parallel",),
        ),
    )(xt, w1, b1, w2c, b2, w3c, b3)

    return out


def pinn_forward(x, params, *, block_n=None, use_bf16=None):
    """PyTorch-layout API: x (N, 2) f32 -> (N, 2) f32.  Jit this wrapper so the
    layout transposes fuse; or use pinn_forward_features_major to avoid them."""
    xt = x.T
    out = pinn_forward_features_major(xt, params, block_n=block_n, use_bf16=use_bf16)
    return out.T


# ---------------------------------------------------------------------------
# Deterministic parameter init (mirrors nn.Linear's U(-1/sqrt(fan_in), +...))
# Weights stored in PyTorch layout (out_features, in_features); biases as (out, 1).
# ---------------------------------------------------------------------------
def init_pinn_params(key):
    dims = [(2, 64), (64, 64), (64, 2)]
    params = []
    for fan_in, fan_out in dims:
        key, kw, kb = jax.random.split(key, 3)
        bound = 1.0 / (fan_in ** 0.5)
        w = jax.random.uniform(kw, (fan_out, fan_in), jnp.float32, -bound, bound)
        b = jax.random.uniform(kb, (fan_out, 1), jnp.float32, -bound, bound)
        params += [w, b]
    return tuple(params)


def pinn_reference(x, params):
    """Pure-JAX f32 reference of the same forward pass."""
    w1, b1, w2, b2, w3, b3 = params
    h = jnp.tanh(x @ w1.T + b1[:, 0])
    h = jnp.tanh(h @ w2.T + b2[:, 0])
    return h @ w3.T + b3[:, 0]


if __name__ == "__main__":
    key = jax.random.PRNGKey(0)
    pkey, xkey = jax.random.split(key)
    params = init_pinn_params(pkey)

    fwd = jax.jit(pinn_forward, static_argnames=("block_n", "use_bf16"))

    # Small batches of (x, t) collocation points:
    #   n=8   -> single ragged block (reads padded, writes clipped)
    #   n=200 -> two grid steps, ragged tail
    #   n=384 -> multi-step grid, exactly tiled
    for n in (8, 200, 384):
        xk = jax.random.fold_in(xkey, n)
        x = jax.random.normal(xk, (n, 2), dtype=jnp.float32)
        ref = pinn_reference(x, params)

        # Default (chip-auto) path: bf16 tanh / bf16 MXU operands on v6e/v7x.
        out = jax.block_until_ready(fwd(x, params))
        assert out.shape == (n, 2)
        assert jnp.all(jnp.isfinite(out)), f"non-finite output (n={n})"
        assert jnp.allclose(out, ref, atol=5e-2, rtol=5e-2), f"mismatch (auto path, n={n})"

        # Explicit f32 compute path (accuracy-sensitive / v5e-style usage).
        out_f32 = jax.block_until_ready(fwd(x, params, use_bf16=False))
        assert jnp.allclose(out_f32, ref, atol=5e-2, rtol=5e-2), f"mismatch (f32 path, n={n})"

    print("KERNEL_OK")
</pallas_src>

<mosaic_0001>
module attributes {stable_mosaic.version = 11 : i64} {
  func.func @_pinn_mlp_kernel(%arg0: i32, %arg1: memref<2x128xf32, #tpu.memory_space<vmem>>, %arg2: memref<64x2xf32, #tpu.memory_space<vmem>>, %arg3: memref<64x1xf32, #tpu.memory_space<vmem>>, %arg4: memref<64x64xbf16, #tpu.memory_space<vmem>>, %arg5: memref<64x1xf32, #tpu.memory_space<vmem>>, %arg6: memref<2x64xbf16, #tpu.memory_space<vmem>>, %arg7: memref<2x1xf32, #tpu.memory_space<vmem>>, %arg8: memref<2x128xf32, #tpu.memory_space<vmem>>) attributes {dimension_semantics = [#tpu.dimension_semantics<parallel>], iteration_bounds = array<i64: 1>, scalar_prefetch = 0 : i64, scratch_operands = 0 : i64, tpu.core_type = #tpu.core_type<tc>, window_params = [{transform_indices = @transform_0, window_bounds = array<i64: 2, 128>}, {pipeline_mode = #tpu.pipeline_mode<synchronous>, transform_indices = @transform_1, window_bounds = array<i64: 64, 2>}, {pipeline_mode = #tpu.pipeline_mode<synchronous>, transform_indices = @transform_2, window_bounds = array<i64: 64, 1>}, {pipeline_mode = #tpu.pipeline_mode<synchronous>, transform_indices = @transform_3, window_bounds = array<i64: 64, 64>}, {pipeline_mode = #tpu.pipeline_mode<synchronous>, transform_indices = @transform_4, window_bounds = array<i64: 64, 1>}, {pipeline_mode = #tpu.pipeline_mode<synchronous>, transform_indices = @transform_5, window_bounds = array<i64: 2, 64>}, {pipeline_mode = #tpu.pipeline_mode<synchronous>, transform_indices = @transform_6, window_bounds = array<i64: 2, 1>}, {transform_indices = @transform_7, window_bounds = array<i64: 2, 128>}]} {
    %c0 = arith.constant 0 : index
    %c0_0 = arith.constant 0 : index
    %0 = vector.load %arg1[%c0, %c0_0] : memref<2x128xf32, #tpu.memory_space<vmem>>, vector<2x128xf32>
    %c0_1 = arith.constant 0 : index
    %c0_2 = arith.constant 0 : index
    %1 = vector.load %arg2[%c0_1, %c0_2] : memref<64x2xf32, #tpu.memory_space<vmem>>, vector<64x2xf32>
    %2 = vector.extract_strided_slice %1 {offsets = [0, 0], sizes = [64, 1], strides = [1, 1]} : vector<64x2xf32> to vector<64x1xf32>
    %3 = vector.extract_strided_slice %0 {offsets = [0, 0], sizes = [1, 128], strides = [1, 1]} : vector<2x128xf32> to vector<1x128xf32>
    %4 = vector.broadcast %2 : vector<64x1xf32> to vector<64x128xf32>
    %5 = vector.broadcast %3 : vector<1x128xf32> to vector<64x128xf32>
    %6 = arith.mulf %4, %5 : vector<64x128xf32>
    %7 = vector.extract_strided_slice %1 {offsets = [0, 1], sizes = [64, 1], strides = [1, 1]} : vector<64x2xf32> to vector<64x1xf32>
    %8 = vector.extract_strided_slice %0 {offsets = [1, 0], sizes = [1, 128], strides = [1, 1]} : vector<2x128xf32> to vector<1x128xf32>
    %9 = vector.broadcast %7 : vector<64x1xf32> to vector<64x128xf32>
    %10 = vector.broadcast %8 : vector<1x128xf32> to vector<64x128xf32>
    %11 = arith.mulf %9, %10 : vector<64x128xf32>
    %12 = arith.addf %6, %11 : vector<64x128xf32>
    %c0_3 = arith.constant 0 : index
    %c0_4 = arith.constant 0 : index
    %13 = vector.load %arg3[%c0_3, %c0_4] : memref<64x1xf32, #tpu.memory_space<vmem>>, vector<64x1xf32>
    %14 = vector.broadcast %13 : vector<64x1xf32> to vector<64x128xf32>
    %15 = arith.addf %12, %14 : vector<64x128xf32>
    %16 = arith.truncf %15 : vector<64x128xf32> to vector<64x128xbf16>
    %17 = math.tanh %16 : vector<64x128xbf16>
    %c0_5 = arith.constant 0 : index
    %c0_6 = arith.constant 0 : index
    %18 = vector.load %arg4[%c0_5, %c0_6] : memref<64x64xbf16, #tpu.memory_space<vmem>>, vector<64x64xbf16>
    %cst = arith.constant dense<0.000000e+00> : vector<64x128xf32>
    %19 = tpu.matmul %18, %17, %cst {dimension_numbers = #tpu.dot_dimension_numbers<[1], [0], [0], [1], [0, 0, 1, 1], [], []>} : vector<64x64xbf16>, vector<64x128xbf16>, vector<64x128xf32> -> vector<64x128xf32>
    %c0_7 = arith.constant 0 : index
    %c0_8 = arith.constant 0 : index
    %20 = vector.load %arg5[%c0_7, %c0_8] : memref<64x1xf32, #tpu.memory_space<vmem>>, vector<64x1xf32>
    %21 = vector.broadcast %20 : vector<64x1xf32> to vector<64x128xf32>
    %22 = arith.addf %19, %21 : vector<64x128xf32>
    %23 = arith.truncf %22 : vector<64x128xf32> to vector<64x128xbf16>
    %24 = math.tanh %23 : vector<64x128xbf16>
    %c0_9 = arith.constant 0 : index
    %c0_10 = arith.constant 0 : index
    %25 = vector.load %arg6[%c0_9, %c0_10] : memref<2x64xbf16, #tpu.memory_space<vmem>>, vector<2x64xbf16>
    %cst_11 = arith.constant dense<0.000000e+00> : vector<2x128xf32>
    %26 = tpu.matmul %25, %24, %cst_11 {dimension_numbers = #tpu.dot_dimension_numbers<[1], [0], [0], [1], [0, 0, 1, 1], [], []>} : vector<2x64xbf16>, vector<64x128xbf16>, vector<2x128xf32> -> vector<2x128xf32>
    %c0_12 = arith.constant 0 : index
    %c0_13 = arith.constant 0 : index
    %27 = vector.load %arg7[%c0_12, %c0_13] : memref<2x1xf32, #tpu.memory_space<vmem>>, vector<2x1xf32>
    %28 = vector.broadcast %27 : vector<2x1xf32> to vector<2x128xf32>
    %29 = arith.addf %26, %28 : vector<2x128xf32>
    %c0_14 = arith.constant 0 : index
    %c0_15 = arith.constant 0 : index
    %30 = vector.load %arg8[%c0_14, %c0_15] : memref<2x128xf32, #tpu.memory_space<vmem>>, vector<2x128xf32>
    tpu.vector_store %arg8[%c0_14, %c0_15], %29 {strides = array<i32>} : memref<2x128xf32, #tpu.memory_space<vmem>>, vector<2x128xf32>,
    return
  }
  func.func @transform_0(%arg0: i32) -> (i32, i32) {
    %c0_i32 = arith.constant 0 : i32
    %c0_i32_0 = arith.constant 0 : i32
    return %c0_i32, %arg0 : i32, i32
  }
  func.func @transform_1(%arg0: i32) -> (i32, i32) {
    %c0_i32 = arith.constant 0 : i32
    %c0_i32_0 = arith.constant 0 : i32
    %c0_i32_1 = arith.constant 0 : i32
    return %c0_i32, %c0_i32_0 : i32, i32
  }
  func.func @transform_2(%arg0: i32) -> (i32, i32) {
    %c0_i32 = arith.constant 0 : i32
    %c0_i32_0 = arith.constant 0 : i32
    %c0_i32_1 = arith.constant 0 : i32
    return %c0_i32, %c0_i32_0 : i32, i32
  }
  func.func @transform_3(%arg0: i32) -> (i32, i32) {
    %c0_i32 = arith.constant 0 : i32
    %c0_i32_0 = arith.constant 0 : i32
    %c0_i32_1 = arith.constant 0 : i32
    return %c0_i32, %c0_i32_0 : i32, i32
  }
  func.func @transform_4(%arg0: i32) -> (i32, i32) {
    %c0_i32 = arith.constant 0 : i32
    %c0_i32_0 = arith.constant 0 : i32
    %c0_i32_1 = arith.constant 0 : i32
    return %c0_i32, %c0_i32_0 : i32, i32
  }
  func.func @transform_5(%arg0: i32) -> (i32, i32) {
    %c0_i32 = arith.constant 0 : i32
    %c0_i32_0 = arith.constant 0 : i32
    %c0_i32_1 = arith.constant 0 : i32
    return %c0_i32, %c0_i32_0 : i32, i32
  }
  func.func @transform_6(%arg0: i32) -> (i32, i32) {
    %c0_i32 = arith.constant 0 : i32
    %c0_i32_0 = arith.constant 0 : i32
    %c0_i32_1 = arith.constant 0 : i32
    return %c0_i32, %c0_i32_0 : i32, i32
  }
  func.func @transform_7(%arg0: i32) -> (i32, i32) {
    %c0_i32 = arith.constant 0 : i32
    %c0_i32_0 = arith.constant 0 : i32
    return %c0_i32, %arg0 : i32, i32
  }
}

</mosaic_0001>

<bundles_post_ra>
// kernel: pinn_forward.1
= control target key start
LH: loop header
LB: loop body
LE: loop exit
PB: predicated region body
PF: predicated region fallthrough
CT: control target
= control target key end

     0   :  { %v503_v2 = vmov 1   ;;  %v504_v3 = vmov 0   ;;  %s667_s0 = inlined_call_operand.vmem [shape: f32[2,8], index: 0, kind: input, shape index: {}]   ;;  %s668_s1 = inlined_call_operand.vmem [shape: f32[64,2], index: 1, kind: input, shape index: {}]   ;;  %s669_s2 = inlined_call_operand.vmem [shape: f32[64,1], index: 2, kind: input, shape index: {}]   ;;  %s670_s3 = inlined_call_operand.vmem [shape: bf16[64,64], index: 3, kind: input, shape index: {}]   ;;  %s671_s4 = inlined_call_operand.vmem [shape: f32[64,1], index: 4, kind: input, shape index: {}]   ;;  %s672_s5 = inlined_call_operand.vmem [shape: bf16[2,64], index: 5, kind: input, shape index: {}]   ;;  %s673_s6 = inlined_call_operand.vmem [shape: f32[2,1], index: 6, kind: input, shape index: {}]   ;;  %s674_s7 = inlined_call_operand.hbm [shape: f32[2,8], index: 7, kind: output, shape index: {}]  }
   0x1   :  { %v35_v0 = vld [vmem:[%s668_s1 + $0x30] sm:$0xff]  ;;  %v33_v1 = vld [vmem:[%s668_s1 + $0x20] sm:$0xff]  ;;  %434 = vset.pattern.permute.xlu1 %v503_v2  ;;  %435 = vset.pattern.permute.xlu2 %v504_v3 }
   0x2   :  { %433 = vset.pattern.permute.xlu0 %v504_v3  ;;  %111 = vperm.xlu1 %434, %v35_v0  }
   0x3   :  { %69 = vperm.xlu0 %433, %v35_v0   ;;  %59 = vperm.xlu2 %435, %v33_v1  }
   0x4   :  { %12 = vsyncpa [#allocation3], 0  ;;  %v36_v4 = vld [vmem:[%s668_s1 + $0x38] sm:$0xff]  ;;  %v34_v5 = vld [vmem:[%s668_s1 + $0x28] sm:$0xff]  ;;  %vm291_vm0 = vcmask 523264   ;;  %s505_s10 = smov [#allocation2]  }
   0x5   :  { %v141_v6 = vld [vmem:[%s669_s2 + $0x30] sm:$0xff]  ;;  %v32_v7 = vld [vmem:[%s668_s1 + $0x18] sm:$0xff]  ;;  %v29_v9 = vld [vmem:[%s668_s1] sm:$0xff]  ;;  %s386_s11 = sshll.u32 %s505_s10, 4  ;;  %s388_s14 = sshll.u32 %s674_s7, 4  ;;  %s387_s11 = int_to_ptr.vmem [resolvable:$true] %s386_s11  ;;  %s389_s14 = int_to_ptr.hbm [resolvable:$true] %s388_s14 }
   0x6   :  { %v31_v8 = vld [vmem:[%s668_s1 + $0x10] sm:$0xff]  ;;  %v142_v10 = vld [vmem:[%s669_s2 + $0x38] sm:$0xff]  ;;  %v140_v11 = vld [vmem:[%s669_s2 + $0x28] sm:$0xff] }
   0x7   :  { %v139_v12 = vld [vmem:[%s669_s2 + $0x20] sm:$0xff]  ;;  %v30_v13 = vld [vmem:[%s668_s1 + $0x8] sm:$0xff]  ;;  %v137_v14 = vld [vmem:[%s669_s2 + $0x10] sm:$0xff] }
   0x8   :  { %v138_v15 = vld [vmem:[%s669_s2 + $0x18] sm:$0xff]  ;;  %v135_v16 = vld [vmem:[%s669_s2] sm:$0xff]  ;;  %v136_v17 = vld [vmem:[%s669_s2 + $0x8] sm:$0xff] }
   0x9   :  { %v230_v18 = vld [vmem:[%s671_s4 + $0x38] sm:$0xff]  ;;  %v227_v19 = vld [vmem:[%s671_s4 + $0x20] sm:$0xff]  ;;  %v228_v20 = vld [vmem:[%s671_s4 + $0x28] sm:$0xff] }
   0xa   :  { %115 = vperm.xlu1 %434, %v36_v4   ;;  %v225_v21 = vld [vmem:[%s671_s4 + $0x10] sm:$0xff]  ;;  %v223_v22 = vld [vmem:[%s671_s4] sm:$0xff]  ;;  %v224_v23 = vld [vmem:[%s671_s4 + $0x8] sm:$0xff] }
   0xb   :  { %74 = vperm.xlu0 %433, %v36_v4   ;;  %64 = vperm.xlu2 %435, %v34_v5   ;;  %v28_v31 = vld [vmem:[%s667_s0] sm:$0x3] }
   0xc   :  { %v615_v32 = vperm.slane %v28_v31, 0  ;;  %v617_v33 = vperm.slane %v28_v31, 1 }
  0x12   :  { %107 = vperm.xlu1 %434, %v34_v5  }
  0x13   :  { %175 = vperm.xlu2 %435, %v141_v6   ;;  %54 = vperm.xlu0 %433, %v32_v7  }
  0x1a   :  { %436 = vset.pattern.permute.xlu1 %v504_v3 }
  0x1b   :  { %49 = vperm.xlu2 %435, %v31_v8   ;;  %39 = vperm.xlu0 %433, %v29_v9  }
  0x1c   :  { %180 = vperm.xlu1 %436, %v142_v10  }
  0x23   :  { %438 = vset.pattern.permute.xlu2 %v503_v2  ;;  %441 = vset.pattern.permute.xlu0 %v503_v2 }
  0x24   :  { %437 = vset.pattern.permute.xlu1 %v503_v2  ;;  %99 = vperm.xlu2 %438, %v32_v7  }
  0x25   :  { %103 = vperm.xlu0 %441, %v33_v1   ;;  %95 = vperm.xlu1 %437, %v31_v8  }
  0x2c   :  { %440 = vset.pattern.permute.xlu2 %v504_v3 }
  0x2d   :  { %439 = vset.pattern.permute.xlu1 %v504_v3  ;;  %170 = vperm.xlu2 %440, %v140_v11  }
  0x2e   :  { %165 = vperm.xlu1 %439, %v139_v12   ;;  %91 = vperm.xlu0 %441, %v30_v13  }
  0x35   :  { %442 = vset.pattern.permute.xlu2 %v503_v2 }
  0x36   :  { %44 = vperm.xlu1 %439, %v30_v13   ;;  %87 = vperm.xlu2 %442, %v29_v9  }
  0x37   :  { %444 = vset.pattern.permute.xlu0 %v504_v3 }
  0x3e   :  { %155 = vperm.xlu1 %439, %v137_v14   ;;  %443 = vset.pattern.permute.xlu2 %v504_v3 }
  0x3f   :  { %160 = vperm.xlu2 %443, %v138_v15  }
  0x46   :  { %145 = vperm.xlu1 %439, %v135_v16  }
  0x47   :  { %150 = vperm.xlu2 %443, %v136_v17  }
  0x4e   :  { %268 = vperm.xlu1 %439, %v230_v18  }
  0x4f   :  { %253 = vperm.xlu2 %443, %v227_v19  }
  0x56   :  { %258 = vperm.xlu1 %439, %v228_v20  }
  0x57   :  { %243 = vperm.xlu2 %443, %v225_v21  }
  0x5d   :  { %v60_v24 = vpop.permute.xlu2 %59 }
  0x5e   :  { %233 = vperm.xlu1 %439, %v223_v22   ;;  %v82_v59 = vmul.f32 %v615_v32, %v60_v24 }
  0x5f   :  { %238 = vperm.xlu2 %443, %v224_v23  }
  0x65   :  { %v65_v25 = vpop.permute.xlu2 %64 }
  0x66   :  { %v83_v56 = vmul.f32 %v615_v32, %v65_v25 }
  0x6d   :  { %v176_v29 = vpop.permute.xlu2 %175 }
  0x74   :  { %v112_v26 = vpop.permute.xlu1 %111 }
  0x75   :  { %v70_v27 = vpop.permute.xlu0 %69  ;;  %v125_v36 = vmul.f32 %v617_v33, %v112_v26  ;;  %v50_v38 = vpop.permute.xlu2 %49 }
  0x76   :  { %v84_v37 = vmul.f32 %v615_v32, %v70_v27  ;;  %v80_v11 = vmul.f32 %v615_v32, %v50_v38 }
  0x78   :  { %v133_v41 = vadd.f32 %v125_v36, %v84_v37 }
  0x7a   :  { %v189_v46 = vadd.f32 %v176_v29, %v133_v41  ;;  %v226_v41 = vld [vmem:[%s671_s4 + $0x18] sm:$0xff] }
  0x7c   :  { %v116_v28 = vpop.permute.xlu1 %115 }
  0x7d   :  { %v75_v30 = vpop.permute.xlu0 %74  ;;  %v126_v39 = vmul.f32 %v617_v33, %v116_v28 }
  0x7e   :  { %v85_v40 = vmul.f32 %v615_v32, %v75_v30  ;;  %v100_v45 = vpop.permute.xlu2 %99 }
  0x7f   :  { %v122_v7 = vmul.f32 %v617_v33, %v100_v45  ;;  %v418_v45 = vld [vmem:[%s670_s3] sm:$0xff] }
  0x80   :  { %v134_v42 = vadd.f32 %v126_v39, %v85_v40 }
  0x84   :  { %v108_v34 = vpop.permute.xlu1 %107 }
  0x85   :  { %v55_v35 = vpop.permute.xlu0 %54  ;;  %v124_v53 = vmul.f32 %v617_v33, %v108_v34 }
  0x86   :  { %v81_v8 = vmul.f32 %v615_v32, %v55_v35 }
  0x87   :  { %v171_v54 = vpop.permute.xlu2 %170  ;;  %v132_v60 = vadd.f32 %v124_v53, %v83_v56 }
  0x88   :  { %v130_v14 = vadd.f32 %v122_v7, %v81_v8 }
  0x89   :  { %v188_v0 = vadd.f32 %v171_v54, %v132_v60 }
  0x8d   :  { %v40_v43 = vpop.permute.xlu0 %39 }
  0x8e   :  { %v181_v44 = vpop.permute.xlu1 %180  ;;  %v78_v25 = vmul.f32 %v615_v32, %v40_v43 }
  0x8f   :  { %v190_v47 = vadd.f32 %v181_v44, %v134_v42 }
  0x90   :  { %v88_v2 = vpop.permute.xlu2 %87 }
  0x91   :  { %v194_v48 = vpack.c.bf16 %v190_v47, %v189_v46  ;;  %v119_v23 = vmul.f32 %v617_v33, %v88_v2  ;;  %v419_v46 = vld [vmem:[%s670_s3 + $0x8] sm:$0xff]  ;;  %v420_v47 = vld [vmem:[%s670_s3 + $0x10] sm:$0xff] }
  0x93   :  { %v201_v49 = vunpack.c.l.bf16 %v194_v48  ;;  %v202_v50 = vunpack.c.h.bf16 %v194_v48  ;;  %v127_v29 = vadd.f32 %v119_v23, %v78_v25  ;;  %v358_v48 = vld [vmem:[%s673_s6] sm:$0x3] }
  0x95   :  { %445 = vtanh.f32 %v201_v49  ;;  %v421_v49 = vld [vmem:[%s670_s3 + $0x18] sm:$0xff] }
  0x96   :  { %447 = vtanh.f32 %v202_v50 }
  0x97   :  { %v96_v51 = vpop.permute.xlu1 %95  ;;  %v104_v52 = vpop.permute.xlu0 %103 }
  0x98   :  { %v123_v57 = vmul.f32 %v617_v33, %v104_v52  ;;  %v121_v9 = vmul.f32 %v617_v33, %v96_v51 }
  0x99   :  { %v161_v12 = vpop.permute.xlu2 %160 }
  0x9a   :  { %v131_v62 = vadd.f32 %v123_v57, %v82_v59  ;;  %v129_v16 = vadd.f32 %v121_v9, %v80_v11  ;;  %v186_v18 = vadd.f32 %v161_v12, %v130_v14 }
  0x9b   :  { %v446_v55 = vpop.eup %445 }
  0x9c   :  { %v448_v58 = vpop.eup %447 }
  0x9d   :  { %v214_v61 = vpack.c.bf16 %v448_v58, %v446_v55 }
  0x9f   :  { %308 = vmatpush.bf16.msra.mxu0 %v214_v61  ;;  %422 = vmatpush.bf16.msra.mxu2 %v214_v61 }
  0xa0   :  { %423 = vmatpush.bf16.msra.mxu3 %v214_v61  ;;  %v166_v63 = vpop.permute.xlu1 %165  ;;  %v92_v15 = vpop.permute.xlu0 %91 }
  0xa1   :  { %v187_v1 = vadd.f32 %v166_v63, %v131_v62  ;;  %v120_v21 = vmul.f32 %v617_v33, %v92_v15  ;;  %v151_v30 = vpop.permute.xlu2 %150  ;;  %v229_v33 = vld [vmem:[%s671_s4 + $0x30] sm:$0xff] }
  0xa2   :  { %263 = vperm.xlu0 %444, %v229_v33  }
  0xa3   :  { %v193_v3 = vpack.c.bf16 %v188_v0, %v187_v1 }
  0xa5   :  { %v199_v4 = vunpack.c.l.bf16 %v193_v3  ;;  %v200_v5 = vunpack.c.h.bf16 %v193_v3 }
  0xa7   :  { %449 = vtanh.f32 %v199_v4 }
  0xa8   :  { %451 = vtanh.f32 %v200_v5  ;;  %v45_v6 = vpop.permute.xlu1 %44 }
  0xa9   :  { %v79_v20 = vmul.f32 %v615_v32, %v45_v6  ;;  %v254_v51 = vpop.permute.xlu2 %253 }
  0xaa   :  { %248 = vperm.xlu0 %444, %v226_v41  }
  0xab   :  { %v128_v26 = vadd.f32 %v120_v21, %v79_v20 }
  0xad   :  { %v450_v10 = vpop.eup %449  ;;  %v184_v35 = vadd.f32 %v151_v30, %v128_v26 }
  0xae   :  { %v452_v13 = vpop.eup %451 }
  0xaf   :  { %v213_v17 = vpack.c.bf16 %v452_v13, %v450_v10 }
  0xb0   :  { %v156_v19 = vpop.permute.xlu1 %155 }
  0xb1   :  { %v185_v22 = vadd.f32 %v156_v19, %v129_v16  ;;  %309 = vmatpush.bf16.msra.mxu0 %v213_v17  ;;  %424 = vmatpush.bf16.msra.mxu2 %v213_v17  ;;  %v244_v58 = vpop.permute.xlu2 %243 }
  0xb2   :  { %425 = vmatpush.bf16.msra.mxu3 %v213_v17  ;;  %361 = vperm.xlu0 %444, %v358_v48  }
  0xb3   :  { %v192_v24 = vpack.c.bf16 %v186_v18, %v185_v22 }
  0xb5   :  { %v197_v27 = vunpack.c.l.bf16 %v192_v24  ;;  %v198_v28 = vunpack.c.h.bf16 %v192_v24 }
  0xb7   :  { %453 = vtanh.f32 %v197_v27 }
  0xb8   :  { %455 = vtanh.f32 %v198_v28  ;;  %v146_v31 = vpop.permute.xlu1 %145 }
  0xb9   :  { %v183_v34 = vadd.f32 %v146_v31, %v127_v29  ;;  %v239_v6 = vpop.permute.xlu2 %238 }
  0xbb   :  { %v191_v36 = vpack.c.bf16 %v184_v35, %v183_v34 }
  0xbd   :  { %v454_v37 = vpop.eup %453  ;;  %v195_v38 = vunpack.c.l.bf16 %v191_v36  ;;  %v196_v39 = vunpack.c.h.bf16 %v191_v36  ;;  %v357_v36 = vld [vmem:[%s672_s5] sm:$0x1] }
  0xbe   :  { %v456_v40 = vpop.eup %455 }
  0xbf   :  { %457 = vtanh.f32 %v195_v38  ;;  %v212_v32 = vpack.c.bf16 %v456_v40, %v454_v37 }
  0xc0   :  { %459 = vtanh.f32 %v196_v39  ;;  %v269_v53 = vpop.permute.xlu1 %268 }
  0xc1   :  { %310 = vmatpush.bf16.msra.mxu0 %v212_v32  ;;  %426 = vmatpush.bf16.msra.mxu2 %v212_v32 }
  0xc2   :  { %427 = vmatpush.bf16.msra.mxu3 %v212_v32 }
  0xc5   :  { %v458_v42 = vpop.eup %457 }
  0xc6   :  { %v460_v43 = vpop.eup %459 }
  0xc7   :  { %v211_v44 = vpack.c.bf16 %v460_v43, %v458_v42 }
  0xc8   :  { %v259_v59 = vpop.permute.xlu1 %258 }
  0xc9   :  { %311 = vmatpush.bf16.msra.mxu0 %v211_v44  ;;  %428 = vmatpush.bf16.msra.mxu2 %v211_v44 }
  0xca   :  { %429 = vmatpush.bf16.msra.mxu3 %v211_v44 }
  0xcc   :  { %413 = vmatmul.msk.bf16.vlgmr.msra.gmra.mxu0 %vm291_vm0, %v418_v45  ;;  %414 = vmatmul.msk.bf16.vlgmr.msra.gmra.mxu2 %vm291_vm0, %v419_v46 }
  0xcd   :  { %415 = vmatmul.msk.bf16.vlgmr.msra.gmra.mxu3 %vm291_vm0, %v420_v47 }
  0xd0   :  { %v234_v14 = vpop.permute.xlu1 %233 }
  0xdd   :  { %416 = vmatmul.msk.bf16.gmra.mxu3 %vm291_vm0, %v421_v49 }
 0x114   :  { %v264_v54 = vpop.permute.xlu0 %263 }
 0x11c   :  { %v249_v61 = vpop.permute.xlu0 %248 }
 0x124   :  { %v362_v37 = vpop.permute.xlu0 %361 }
 0x149   :  { %v313_v56 = vpop.f32.mrf.mxu0 }
 0x14a   :  { %v314_v16 = vadd.f32 %v313_v56, %v234_v14 }
 0x14f   :  { %v318_v55 = vpop.f32.mrf.mxu2 }
 0x150   :  { %v323_v50 = vpop.f32.mrf.mxu3  ;;  %v319_v7 = vadd.f32 %v318_v55, %v244_v58 }
 0x151   :  { %v324_v63 = vadd.f32 %v323_v50, %v254_v51  ;;  %v315_v1 = vpop.f32.mrf.mxu0 }
 0x152   :  { %v316_v9 = vadd.f32 %v315_v1, %v239_v6 }
 0x154   :  { %v333_v17 = vpack.c.bf16 %v316_v9, %v314_v16 }
 0x156   :  { %v337_v21 = vunpack.c.l.bf16 %v333_v17  ;;  %v338_v23 = vunpack.c.h.bf16 %v333_v17 }
 0x157   :  { %v320_v62 = vpop.f32.mrf.mxu2 }
 0x158   :  { %v325_v52 = vpop.f32.mrf.mxu3  ;;  %v321_v2 = vadd.f32 %v320_v62, %v249_v61 }
 0x159   :  { %v326_v60 = vadd.f32 %v325_v52, %v259_v59 }
 0x15a   :  { %v334_v10 = vpack.c.bf16 %v321_v2, %v319_v7 }
 0x15b   :  { %v335_v3 = vpack.c.bf16 %v326_v60, %v324_v63 }
 0x15c   :  { %v339_v18 = vunpack.c.l.bf16 %v334_v10  ;;  %v340_v19 = vunpack.c.h.bf16 %v334_v10 }
 0x15d   :  { %v341_v11 = vunpack.c.l.bf16 %v335_v3  ;;  %v342_v15 = vunpack.c.h.bf16 %v335_v3 }
 0x160   :  { %v328_v57 = vpop.f32.mrf.mxu3 }
 0x161   :  { %v329_v4 = vadd.f32 %v328_v57, %v264_v54 }
 0x168   :  { %v330_v0 = vpop.f32.mrf.mxu3 }
 0x169   :  { %v331_v5 = vadd.f32 %v330_v0, %v269_v53 }
 0x16b   :  { %v336_v8 = vpack.c.bf16 %v331_v5, %v329_v4 }
 0x16d   :  { %v343_v12 = vunpack.c.l.bf16 %v336_v8  ;;  %v344_v13 = vunpack.c.h.bf16 %v336_v8 }
 0x16f   :  { %461 = vtanh.f32 %v343_v12 }
 0x170   :  { %463 = vtanh.f32 %v344_v13 }
 0x171   :  { %465 = vtanh.f32 %v341_v11 }
 0x172   :  { %467 = vtanh.f32 %v342_v15 }
 0x173   :  { %469 = vtanh.f32 %v339_v18 }
 0x174   :  { %471 = vtanh.f32 %v340_v19 }
 0x175   :  { %v462_v20 = vpop.eup %461  ;;  %473 = vtanh.f32 %v337_v21 }
 0x176   :  { %v464_v22 = vpop.eup %463  ;;  %475 = vtanh.f32 %v338_v23 }
 0x177   :  { %v466_v24 = vpop.eup %465  ;;  %v356_v25 = vpack.c.bf16 %v464_v22, %v462_v20 }
 0x178   :  { %v468_v26 = vpop.eup %467 }
 0x179   :  { %371 = vmatpush.bf16.msra.mxu1 %v356_v25  ;;  %v470_v27 = vpop.eup %469  ;;  %v355_v28 = vpack.c.bf16 %v468_v26, %v466_v24 }
 0x17a   :  { %v472_v29 = vpop.eup %471 }
 0x17b   :  { %v474_v30 = vpop.eup %473  ;;  %v354_v31 = vpack.c.bf16 %v472_v29, %v470_v27 }
 0x17c   :  { %v476_v34 = vpop.eup %475 }
 0x17d   :  { %372 = vmatpush.bf16.msra.mxu1 %v355_v28  ;;  %v353_v35 = vpack.c.bf16 %v476_v34, %v474_v30 }
 0x181   :  { %373 = vmatpush.bf16.msra.mxu1 %v354_v31 }
 0x185   :  { %374 = vmatpush.bf16.msra.mxu1 %v353_v35 }
 0x188   :  { %417 = vmatmul.msk.bf16.vlgmr.msra.gmra.mxu1 %vm291_vm0, %v357_v36 }
 0x205   :  { %v376_v38 = vpop.f32.mrf.mxu1 }
 0x206   :  { %v377_v39 = vadd.f32 %v376_v38, %v362_v37 }
 0x208   :  { %380 = vst [vmem:[#allocation2] sm:$0x3] %v377_v39 }
 0x209   :  { %391 = dma.vmem_to_hbm [thread:$0]  %s387_s11, 32, %s389_s14, [#allocation3]  }
 0x20d   :  { %v378_v33 = vpop.f32.mrf.mxu1 }
 0x20e   :  { %501 = dma.done.wait [#allocation3], 32  }
 0x20f   :  { %502 = vsyncadd [#allocation3], 4294967264 }
 0x210   :  { %396 = vsyncpa [#allocation3], 1 }

</bundles_post_ra>
